<compile_context>
chip_gen: v7x
topology: tpu7x:2x2x1
jax: 0.10.0
libtpu: 0.0.40
codegen_flags: <defaults>
</compile_context>

<pallas_src>
import math

import jax
import jax.numpy as jnp
from jax.experimental import pallas as pl
from jax.experimental.pallas import tpu as pltpu


def _vmem_capacity_bytes():
    """Physical VMEM per TensorCore (128 MiB v5e/v6e, 64 MiB v7x); safe fallback."""
    try:
        cap = getattr(pltpu.get_tpu_info(), "vmem_capacity_bytes", None)
        if cap:
            return int(cap)
    except Exception:
        pass
    return 64 << 20  # conservative (v7x-sized) fallback


def _tile_bytes(bb, tm, N, in_dim, out_pad):
    a_tile = bb * tm * N * 2           # bf16 A row tile
    x_tile = bb * N * in_dim * 4       # f32 node features (full rows)
    o_tile = bb * tm * out_pad * 4     # f32 output tile (lane-dense)
    scratch = bb * N * out_pad * 2     # bf16 resident x0 @ W
    return 2 * (a_tile + x_tile + o_tile) + scratch   # x2: double buffering


def _pick_tiles(B, N, in_dim, out_pad, budget_bytes, tm_cap=512, bb_cap=16):
    """Pick (graphs per step bb, A row-tile tm) that fit the VMEM budget."""
    tm = N if N <= tm_cap else tm_cap            # full N, or a multiple of 8
    bb = 1
    for cand in range(min(B, bb_cap), 0, -1):
        if B % cand:
            continue
        if B >= 2 and B // cand < 2:
            continue                              # keep >= 2 batch blocks (2 TCs on v7x)
        if _tile_bytes(cand, tm, N, in_dim, out_pad) <= budget_bytes:
            bb = cand
            break
    # If even a single graph does not fit, shrink the A row tile.
    while bb == 1 and tm > 8 and _tile_bytes(1, tm, N, in_dim, out_pad) > budget_bytes:
        tm = max(8, ((tm // 2) + 7) // 8 * 8)
    return bb, tm


def _gcn_kernel(a_ref, x_ref, w_ref, b_ref, o_ref, xw_ref):
    # a_ref : (Bb, tm, N)        bf16 row tile of A for Bb graphs
    # x_ref : (Bb, N, in)        f32 node features for the same graphs
    # w_ref : (in, out_pad)      f32 Linear weight, pre-transposed + lane-padded
    # b_ref : (1, out_pad)       f32 bias (lane-padded)
    # o_ref : (Bb, tm, out_pad)  output tile
    # xw_ref: (Bb, N, out_pad)   bf16 resident x0 @ W, computed once per batch block
    Bb, N, in_dim = x_ref.shape
    out_pad = w_ref.shape[1]

    # Compute xw = x0 @ W only on the first row tile of each batch block; the
    # scratch persists across the row-tile ("arbitrary") grid axis.
    @pl.when(pl.program_id(1) == 0)
    def _compute_xw():
        if N % 8 == 0:
            # Flatten graphs onto the sublane axis -> one dense matmul.
            x_flat = x_ref[...].reshape(Bb * N, in_dim)
            xw = jnp.dot(x_flat, w_ref[...], preferred_element_type=jnp.float32)
            xw_ref[...] = xw.reshape(Bb, N, out_pad).astype(xw_ref.dtype)
        else:
            for g in range(Bb):  # static unroll (Bb is small by construction)
                xw_ref[g] = jnp.dot(
                    x_ref[g], w_ref[...], preferred_element_type=jnp.float32
                ).astype(xw_ref.dtype)

    # out_tile = A_tile @ xw + b   (bf16 x bf16 -> f32 accumulation on the MXU)
    x = jnp.einsum("bmk,bko->bmo", a_ref[...], xw_ref[...],
                   preferred_element_type=jnp.float32) + b_ref[...]

    # activation(x) - 2/(x^2 + 1), activation = ReLU; reciprocal on the EUP.
    act = jnp.maximum(x, 0.0)
    x1 = act - 2.0 * pl.reciprocal(x * x + 1.0, approx=True)
    o_ref[...] = x1.astype(o_ref.dtype)


def gcn_forward(A, x0, weight_t, bias):
    """A: (B,N,N), x0: (B,N,in_dim), weight_t: (in_dim,out_dim), bias: (1,out_dim)."""
    B, N, _ = A.shape
    in_dim = x0.shape[-1]
    out_dim = weight_t.shape[-1]

    # Lane-dense output: pad the Linear's output features to a multiple of 128.
    out_pad = ((out_dim + 127) // 128) * 128
    if out_pad != out_dim:
        weight_t = jnp.pad(weight_t, ((0, 0), (0, out_pad - out_dim)))
        bias = jnp.pad(bias, ((0, 0), (0, out_pad - out_dim)))

    # Halve the dominant HBM stream: A in bf16, accumulation stays f32.
    A_b = A.astype(jnp.bfloat16)

    vmem_cap = _vmem_capacity_bytes()
    bb, tm = _pick_tiles(B, N, in_dim, out_pad, budget_bytes=int(vmem_cap * 0.6))
    nb = B // bb
    nt = pl.cdiv(N, tm)

    param_bytes = (in_dim * out_pad + out_pad) * 4
    need = _tile_bytes(bb, tm, N, in_dim, out_pad) + 2 * param_bytes + (2 << 20)
    vmem_limit = int(min(max(need, 8 << 20), int(vmem_cap * 0.75)))

    # FLOPs after reassociation: per graph N*in*out_pad + N*N*out_pad, x2 (MAC).
    flops = 2 * B * N * out_pad * (in_dim + N)
    bytes_accessed = int(A_b.size * 2 + x0.size * 4
                         + weight_t.size * 4 + bias.size * 4
                         + B * N * out_pad * 4)
    cost = pl.CostEstimate(flops=flops, transcendentals=0,
                           bytes_accessed=bytes_accessed)

    grid_spec = pltpu.PrefetchScalarGridSpec(
        num_scalar_prefetch=0,
        grid=(nb, nt),
        in_specs=[
            pl.BlockSpec((bb, tm, N), lambda i, j: (i, j, 0)),       # A row tile (bf16)
            pl.BlockSpec((bb, N, in_dim), lambda i, j: (i, 0, 0)),   # x0 (full rows)
            pl.BlockSpec((in_dim, out_pad), lambda i, j: (0, 0)),    # W^T (padded)
            pl.BlockSpec((1, out_pad), lambda i, j: (0, 0)),         # bias (padded)
        ],
        out_specs=pl.BlockSpec((bb, tm, out_pad), lambda i, j: (i, j, 0)),
        scratch_shapes=[pltpu.VMEM((bb, N, out_pad), jnp.bfloat16)],
    )

    out = pl.pallas_call(
        _gcn_kernel,
        out_shape=jax.ShapeDtypeStruct((B, N, out_pad), x0.dtype),
        grid_spec=grid_spec,
        compiler_params=pltpu.CompilerParams(
            dimension_semantics=("parallel", "arbitrary"),
            vmem_limit_bytes=vmem_limit,
        ),
        cost_estimate=cost,
    )(A_b, x0, weight_t, bias)

    return out[..., :out_dim] if out_pad != out_dim else out


def gcn_reference(A, x0, weight_t, bias):
    """Pure-JAX reference in the ORIGINAL (A @ x0) @ W order (matches torch)."""
    ax = jnp.einsum("bij,bjd->bid", A, x0)
    x = jnp.einsum("bid,de->bie", ax, weight_t) + bias
    return jnp.maximum(x, 0.0) - 2.0 / (x * x + 1.0)


if __name__ == "__main__":
    # Small deterministic shapes.
    B, N = 2, 16          # batch of graphs, 16 nodes each
    in_dim, out_dim = 32, 32

    key = jax.random.PRNGKey(0)
    k_a, k_x, k_w, k_b = jax.random.split(key, 4)

    # Adjacency-like matrices and node features.
    A = jax.random.uniform(k_a, (B, N, N), dtype=jnp.float32)
    x0 = jax.random.normal(k_x, (B, N, in_dim), dtype=jnp.float32)

    # Parameter init matching reset_parameters: W ~ U(-stdv, stdv), stdv = 1/sqrt(out_dim)
    stdv = 1.0 / math.sqrt(out_dim)
    weight = jax.random.uniform(k_w, (out_dim, in_dim), dtype=jnp.float32,
                                minval=-stdv, maxval=stdv)
    # Linear bias default init: U(-1/sqrt(in_dim), 1/sqrt(in_dim))
    bound = 1.0 / math.sqrt(in_dim)
    bias = jax.random.uniform(k_b, (out_dim,), dtype=jnp.float32,
                              minval=-bound, maxval=bound)

    weight_t = weight.T                 # (in_dim, out_dim) for the kernel
    bias2d = bias.reshape(1, out_dim)   # (1, out_dim)

    out = gcn_forward(A, x0, weight_t, bias2d)
    out = jax.block_until_ready(out)

    ref = gcn_reference(A, x0, weight_t, bias2d)
    assert out.shape == (B, N, out_dim)
    # Tolerance accounts for bf16 streaming of A / x0@W (rel ~2^-9 per operand,
    # f32 accumulation), the reassociated matmul order, and the EUP approx
    # reciprocal (~2^-12) in the epilogue.
    assert jnp.allclose(out, ref, atol=5e-2, rtol=5e-2), "mismatch vs reference"

    print("KERNEL_OK")
</pallas_src>

<mosaic_0001>
module attributes {stable_mosaic.version = 11 : i64} {
  func.func @_gcn_kernel(%arg0: i32, %arg1: i32, %arg2: memref<1x16x16xbf16, #tpu.memory_space<vmem>>, %arg3: memref<1x16x32xf32, #tpu.memory_space<vmem>>, %arg4: memref<32x128xf32, #tpu.memory_space<vmem>>, %arg5: memref<1x128xf32, #tpu.memory_space<vmem>>, %arg6: memref<1x16x128xf32, #tpu.memory_space<vmem>>, %arg7: memref<1x16x128xbf16, #tpu.memory_space<vmem>>) attributes {dimension_semantics = [#tpu.dimension_semantics<parallel>, #tpu.dimension_semantics<arbitrary>], iteration_bounds = array<i64: 2, 1>, scalar_prefetch = 0 : i64, scratch_operands = 1 : i64, tpu.core_type = #tpu.core_type<tc>, window_params = [{transform_indices = @transform_0, window_bounds = array<i64: 1, 16, 16>}, {transform_indices = @transform_1, window_bounds = array<i64: 1, 16, 32>}, {pipeline_mode = #tpu.pipeline_mode<synchronous>, transform_indices = @transform_2, window_bounds = array<i64: 32, 128>}, {pipeline_mode = #tpu.pipeline_mode<synchronous>, transform_indices = @transform_3, window_bounds = array<i64: 1, 128>}, {transform_indices = @transform_4, window_bounds = array<i64: 1, 16, 128>}]} {
    %c0_i32 = arith.constant 0 : i32
    %0 = arith.cmpi eq, %arg1, %c0_i32 : i32
    %1 = arith.extui %0 : i1 to i32
    %c0_i32_0 = arith.constant 0 : i32
    %2 = arith.cmpi ne, %1, %c0_i32_0 : i32
    scf.if %2 {
      %c0_14 = arith.constant 0 : index
      %c0_15 = arith.constant 0 : index
      %c0_16 = arith.constant 0 : index
      %20 = vector.load %arg3[%c0_14, %c0_15, %c0_16] : memref<1x16x32xf32, #tpu.memory_space<vmem>>, vector<1x16x32xf32>
      %21 = vector.shape_cast %20 : vector<1x16x32xf32> to vector<16x32xf32>
      %c0_17 = arith.constant 0 : index
      %c0_18 = arith.constant 0 : index
      %22 = vector.load %arg4[%c0_17, %c0_18] : memref<32x128xf32, #tpu.memory_space<vmem>>, vector<32x128xf32>
      %cst_19 = arith.constant dense<0.000000e+00> : vector<16x128xf32>
      %23 = tpu.matmul %21, %22, %cst_19 {dimension_numbers = #tpu.dot_dimension_numbers<[1], [0], [0], [1], [0, 0, 1, 1], [], []>} : vector<16x32xf32>, vector<32x128xf32>, vector<16x128xf32> -> vector<16x128xf32>
      %24 = vector.shape_cast %23 : vector<16x128xf32> to vector<1x16x128xf32>
      %25 = arith.truncf %24 : vector<1x16x128xf32> to vector<1x16x128xbf16>
      %c0_20 = arith.constant 0 : index
      %c0_21 = arith.constant 0 : index
      %c0_22 = arith.constant 0 : index
      %26 = vector.load %arg7[%c0_20, %c0_21, %c0_22] : memref<1x16x128xbf16, #tpu.memory_space<vmem>>, vector<1x16x128xbf16>
      tpu.vector_store %arg7[%c0_20, %c0_21, %c0_22], %25 {strides = array<i32>} : memref<1x16x128xbf16, #tpu.memory_space<vmem>>, vector<1x16x128xbf16>,
    } else {
    }
    %c0 = arith.constant 0 : index
    %c0_1 = arith.constant 0 : index
    %c0_2 = arith.constant 0 : index
    %3 = vector.load %arg2[%c0, %c0_1, %c0_2] : memref<1x16x16xbf16, #tpu.memory_space<vmem>>, vector<1x16x16xbf16>
    %c0_3 = arith.constant 0 : index
    %c0_4 = arith.constant 0 : index
    %c0_5 = arith.constant 0 : index
    %4 = vector.load %arg7[%c0_3, %c0_4, %c0_5] : memref<1x16x128xbf16, #tpu.memory_space<vmem>>, vector<1x16x128xbf16>
    "tpu.trace_start"() <{level = 10 : i32, message = "bmk,bko->bmo"}> : () -> ()
    %cst = arith.constant dense<0.000000e+00> : vector<1x16x128xf32>
    %5 = tpu.matmul %3, %4, %cst {dimension_numbers = #tpu.dot_dimension_numbers<[2], [1], [1], [2], [0, 0, 0, 1, 1, 2], [0], [0]>} : vector<1x16x16xbf16>, vector<1x16x128xbf16>, vector<1x16x128xf32> -> vector<1x16x128xf32>
    "tpu.trace_stop"() : () -> ()
    %c0_6 = arith.constant 0 : index
    %c0_7 = arith.constant 0 : index
    %6 = vector.load %arg5[%c0_6, %c0_7] : memref<1x128xf32, #tpu.memory_space<vmem>>, vector<1x128xf32>
    %7 = vector.shape_cast %6 : vector<1x128xf32> to vector<1x1x128xf32>
    %8 = vector.broadcast %7 : vector<1x1x128xf32> to vector<1x16x128xf32>
    %9 = arith.addf %5, %8 : vector<1x16x128xf32>
    %cst_8 = arith.constant 0.000000e+00 : f32
    %10 = vector.broadcast %cst_8 : f32 to vector<1x16x128xf32>
    %11 = arith.maximumf %9, %10 : vector<1x16x128xf32>
    %12 = arith.mulf %9, %9 : vector<1x16x128xf32>
    %cst_9 = arith.constant 1.000000e+00 : f32
    %13 = vector.broadcast %cst_9 : f32 to vector<1x16x128xf32>
    %14 = arith.addf %12, %13 : vector<1x16x128xf32>
    %15 = tpu.reciprocal %14 {approx = true} : vector<1x16x128xf32> -> vector<1x16x128xf32>
    %cst_10 = arith.constant 2.000000e+00 : f32
    %16 = vector.broadcast %cst_10 : f32 to vector<1x16x128xf32>
    %17 = arith.mulf %16, %15 : vector<1x16x128xf32>
    %18 = arith.subf %11, %17 : vector<1x16x128xf32>
    %c0_11 = arith.constant 0 : index
    %c0_12 = arith.constant 0 : index
    %c0_13 = arith.constant 0 : index
    %19 = vector.load %arg6[%c0_11, %c0_12, %c0_13] : memref<1x16x128xf32, #tpu.memory_space<vmem>>, vector<1x16x128xf32>
    tpu.vector_store %arg6[%c0_11, %c0_12, %c0_13], %18 {strides = array<i32>} : memref<1x16x128xf32, #tpu.memory_space<vmem>>, vector<1x16x128xf32>,
    return
  }
  func.func @transform_0(%arg0: i32, %arg1: i32) -> (i32, i32, i32) {
    %c0_i32 = arith.constant 0 : i32
    %c0_i32_0 = arith.constant 0 : i32
    return %arg0, %arg1, %c0_i32 : i32, i32, i32
  }
  func.func @transform_1(%arg0: i32, %arg1: i32) -> (i32, i32, i32) {
    %c0_i32 = arith.constant 0 : i32
    %c0_i32_0 = arith.constant 0 : i32
    %c0_i32_1 = arith.constant 0 : i32
    return %arg0, %c0_i32, %c0_i32_0 : i32, i32, i32
  }
  func.func @transform_2(%arg0: i32, %arg1: i32) -> (i32, i32) {
    %c0_i32 = arith.constant 0 : i32
    %c0_i32_0 = arith.constant 0 : i32
    %c0_i32_1 = arith.constant 0 : i32
    return %c0_i32, %c0_i32_0 : i32, i32
  }
  func.func @transform_3(%arg0: i32, %arg1: i32) -> (i32, i32) {
    %c0_i32 = arith.constant 0 : i32
    %c0_i32_0 = arith.constant 0 : i32
    %c0_i32_1 = arith.constant 0 : i32
    return %c0_i32, %c0_i32_0 : i32, i32
  }
  func.func @transform_4(%arg0: i32, %arg1: i32) -> (i32, i32, i32) {
    %c0_i32 = arith.constant 0 : i32
    %c0_i32_0 = arith.constant 0 : i32
    return %arg0, %arg1, %c0_i32 : i32, i32, i32
  }
}

</mosaic_0001>

<bundles_post_ra>
// kernel: tpu_custom_call.1
= control target key start
LH: loop header
LB: loop body
LE: loop exit
PB: predicated region body
PF: predicated region fallthrough
CT: control target
= control target key end

     0   :  { %s1242_s0 = inlined_call_operand.hbm [shape: bf16[2,16,16], index: 0, kind: input, shape index: {}]   ;;  %s1243_s1 = inlined_call_operand.hbm [shape: f32[2,16,32], index: 1, kind: input, shape index: {}]   ;;  %s1244_s2 = inlined_call_operand.hbm [shape: f32[32,128], index: 2, kind: input, shape index: {}]   ;;  %s1245_s3 = inlined_call_operand.vmem [shape: f32[1,128], index: 3, kind: input, shape index: {}]   ;;  %s1246_s4 = inlined_call_operand.hbm [shape: f32[2,16,128], index: 4, kind: output, shape index: {}]  }
   0x1   :  { %1253 = sst [smem:[#allocation16_spill]] %s1242_s0 }
   0x2   :  { %1254 = sst [smem:[#allocation17_spill]] %s1244_s2 }
   0x3   :  { %9 = vsyncpa [#allocation4], 0 }
   0x4   :  { %11 = vsyncpa [#allocation4 + $0x1], 0 }
   0x5   :  { %12 = vsyncpa [#allocation7], 0 }
   0x6   :  { %14 = vsyncpa [#allocation7 + $0x1], 0 }
   0x7   :  { %15 = vsyncpa [#allocation5], 0 }
   0x8   :  { %17 = vsyncpa [#allocation5 + $0x1], 0  ;;  %s964_s15 = smov 0   ;;  %s966_s16 = smov 0  }
   0x9   :  { %s968_s17 = smov 0   ;;  %s970_s18 = smov 0  }
   0xa   :  { %s972_s19 = smov 0   ;;  %s974_s20 = smov 0  }
   0xb LB: > { %s995_s21 = sadd.s32 4294967295, %s925_s20   ;;  %s595_s22 = sadd.s32 4294967294, %s925_s20   ;;  %s925_s20 = sphi %s974_s20, %s23_s20   ;;  %s921_s19 = sphi %s972_s19, %s1282_s19   ;;  %s917_s18 = sphi %s970_s18, %s1281_s18   ;;  %s913_s17 = sphi %s968_s17, %s1280_s17   ;;  %s909_s16 = sphi %s966_s16, %s1279_s16   ;;  %s905_s15 = sphi %s964_s15, %s1278_s15  }
   0xc   : > { %p57_p0 = scmp.ne.s32.totalorder %s909_s16, %s905_s15  ;;  %p1247_p1 = scmp.eq.s32.totalorder %s995_s21, 0 }
   0xd   : > { %p157_p3 = scmp.eq.s32.totalorder %s595_s22, 1  ;;  %p596_p5 = scmp.ge.s32.totalorder %s925_s20, 1 }
   0xe   : > { %p1004_p4 = por %p1247_p1, %p57_p0  ;;  %p164_p7 = scmp.lt.s32.totalorder %s925_s20, 3 }
   0xf   : > { %p1009_p6 = por %p157_p3, %p57_p0  ;;  %s927_s26 = smov [#allocation8]  }
  0x10   : > { %s1255_s23 = scalar_select %p1004_p4, 1, 0 }
  0x11   : > { %s1256_s24 = scalar_select %p1009_p6, 1, 0 }
  0x12   : > { %p1014_p8 = pnand %p596_p5, %p164_p7  ;;  %s176_s27 = sshll.u32 %s927_s26, 4  ;;  %s177_s27 = int_to_ptr.vmem [resolvable:$true] %s176_s27 }
  0x13   : > { %s35_s29 = sadd.s32 1, %s921_s19  ;;  %s1259_s2 = sld [smem:[#allocation17_spill]] }
  0x14   : > { %s1257_s25 = scalar_select %p1014_p8, 1, 0 }
  0x15   : > { %p666_p9 = pneg %p1014_p8 }
  0x17   : > { %p1023_p11 = pnand %p666_p9, %p1247_p1 }
  0x19   : > { %s747_s6 = scalar_lea.hbm %s1259_s2, 512  ;;  %p749_p13 = pneg %p1023_p11 }
  0x1a   : > { %p748_p12 = scmp.ne.s32.totalorder %s1259_s2, %s747_s6  ;;  %p754_p5 = scmp.lt.u32.totalorder %s747_s6, %s1259_s2 }
  0x1c   : > { %p750_p0 = pnand %p749_p13, %p748_p12 }
  0x1e   : > { %p751_p3 = pneg %p750_p0 }
  0x20   : > { %p756_p7 = pnand %p754_p5, %p751_p3 }
  0x22   : > { %759 = shalt.err (!%p756_p7)
}
  0x23   : > { %s760_s11 = scalar_lea.vmem %s177_s27, 512  ;;  %p768_p2 = scmp.lt.s32.totalorder %s177_s27, %s177_s27 }
  0x24   : > { %p761_p9 = scmp.ne.s32.totalorder %s177_s27, %s760_s11  ;;  %p769_p6 = scmp.lt.s32.totalorder %s760_s11, %s760_s11 }
  0x26   : > { %p763_p10 = pnand %p761_p9, %p749_p13  ;;  %p770_p4 = por %p769_p6, %p768_p2 }
  0x28   : > { %p764_p1 = pneg %p763_p10 }
  0x2a   : > { %p771_p8 = pnand %p770_p4, %p764_p1 }
  0x2c   : > { %774 = shalt.err (!%p771_p8)
}
  0x2d   : > { %s1250_s12 = smov 128   ;;  %s1251_s13 = smov 8  }
  0x2e   : > { %669 = dma.hbm_to_vmem [thread:$0]  (!%p1023_p11), %s1259_s2, 512, %s177_s27, [#allocation7], %s1250_s12, %s1250_s12, %s1251_s13  }
  0x2f   : > { %p37_p1 = scmp.ge.s32.totalorder %s35_s29, 2  ;;  %s44_s26 = sadd.s32 1, %s913_s17 }
  0x30   : > { %p51_p2 = scmp.ne.s32.totalorder %s913_s17, %s909_s16  ;;  %p52_p4 = scmp.eq.s32.totalorder %s925_s20, 0 }
  0x31   : > { %s1284_s29 = smov (%p37_p1, %s35_s29), 0  ;;  %p1262_p8 = scmp.eq.s32.totalorder %s995_s21, 1 }
  0x32   : > { %1260 = sst [smem:[#allocation14_spill]] %s1284_s29  ;;  %p1053_p6 = por %p52_p4, %p51_p2 }
  0x33   : > { %p1059_p10 = por %p1262_p8, %p51_p2  ;;  %s39_s5 = ssub.s32 %s921_s19, %s1284_s29 }
  0x34   : > { %p682_p11 = scmp.lt.s32.totalorder %s925_s20, 2  ;;  %p42_p12 = scmp.eq.s32.totalorder %s39_s5, 0 }
  0x35   : > { %s1067_s27 = sand.u32 1, %s913_s17   ;;  %s620_s8 = sshll.u32 %s921_s19, 7 }
  0x36   : > { %s599_s6 = sshll.u32 %s1067_s27, 3  ;;  %s1265_s0 = sld [smem:[#allocation16_spill]] }
  0x37   : > { %s1071_s7 = scalar_select %p42_p12, %s913_s17, %s44_s26  }
  0x38   : > { %s197_s14 = scalar_lea.vmem [#allocation3], %s599_s6  ;;  %p1083_p13 = pnand %p682_p11, %p1053_p6 }
  0x39   : > { %1264 = sst [smem:[#allocation15_spill]] %s1071_s7  ;;  %s206_s22 = sshll.u32 %s197_s14, 4  ;;  %s1079_s22 = int_to_ptr.vmem [resolvable:$true] %s206_s22 }
  0x3a   : > { %s194_s12 = scalar_lea.sflag [#allocation4], %s1067_s27  ;;  %p777_p3 = pneg %p1083_p13 }
  0x3c   : > { %s1077_s11 = scalar_lea.hbm %s1265_s0, %s620_s8  ;;  %s780_s30 = scalar_lea.hbm %s1265_s0, 256 }
  0x3d   : > { %s775_s9 = scalar_lea.hbm %s1077_s11, 128  ;;  %p781_p9 = scmp.lt.u32.totalorder %s1077_s11, %s1265_s0 }
  0x3e   : > { %p776_p0 = scmp.ne.s32.totalorder %s1077_s11, %s775_s9  ;;  %p782_p1 = scmp.lt.u32.totalorder %s780_s30, %s775_s9 }
  0x3f   : > { %p784_p4 = scmp.lt.u32.totalorder %s775_s9, %s1077_s11 }
  0x40   : > { %p778_p5 = pnand %p777_p3, %p776_p0  ;;  %p783_p2 = por %p782_p1, %p781_p9 }
  0x42   : > { %p779_p7 = pneg %p778_p5  ;;  %p785_p6 = por %p784_p4, %p783_p2 }
  0x44   : > { %p786_p8 = pnand %p785_p6, %p779_p7 }
  0x46   : > { %789 = shalt.err (!%p786_p8)
}
  0x47   : > { %s790_s13 = scalar_lea.vmem %s1079_s22, 128  ;;  %s930_s6 = smov [#allocation3]  }
  0x48   : > { %p791_p11 = scmp.ne.s32.totalorder %s1079_s22, %s790_s13  ;;  %s795_s8 = sshll.u32 %s930_s6, 4  ;;  %s796_s8 = int_to_ptr.vmem [resolvable:$false] %s795_s8 }
  0x49   : > { %s797_s10 = scalar_lea.vmem %s796_s8, 256  ;;  %p798_p5 = scmp.lt.s32.totalorder %s1079_s22, %s796_s8 }
  0x4a   : > { %p793_p12 = pnand %p791_p11, %p777_p3  ;;  %p799_p9 = scmp.lt.s32.totalorder %s797_s10, %s790_s13 }
  0x4c   : > { %p794_p0 = pneg %p793_p12  ;;  %p800_p1 = por %p799_p9, %p798_p5 }
  0x4e   : > { %p801_p2 = pnand %p800_p1, %p794_p0 }
  0x50   : > { %804 = shalt.err (!%p801_p2)
}
  0x51   : > { %s931_s9 = smov 64   ;;  %s932_s30 = smov 4  }
  0x52   : > { %673 = dma.hbm_to_vmem [thread:$0]  (!%p1083_p13), %s1077_s11, 128, %s1079_s22, %s194_s12, %s931_s9, %s931_s9, %s932_s30  }
  0x53   : > { %s602_s14 = sshll.u32 %s1067_s27, 4  ;;  %s621_s6 = sshll.u32 %s921_s19, 8 }
  0x54   : > { %s1121_s10 = scalar_lea.hbm %s1243_s1, %s621_s6  ;;  %s220_s26 = scalar_lea.vmem [#allocation6], %s602_s14 }
  0x55   : > { %s227_s0 = sshll.u32 %s220_s26, 4  ;;  %s1267_s2 = sand.u32 1, %s925_s20   ;;  %s1123_s0 = int_to_ptr.vmem [resolvable:$true] %s227_s0 }
  0x56   : > { %s1127_s29 = scalar_lea.sflag [#allocation7], %s1267_s2  ;;  %s805_s7 = scalar_lea.hbm %s1121_s10, 256 }
  0x57   : > { %p806_p7 = scmp.ne.s32.totalorder %s1121_s10, %s805_s7  ;;  %s810_s11 = scalar_lea.hbm %s1243_s1, 512 }
  0x58   : > { %p811_p8 = scmp.lt.u32.totalorder %s1121_s10, %s1243_s1  ;;  %p812_p11 = scmp.lt.u32.totalorder %s810_s11, %s805_s7 }
  0x59   : > { %p808_p4 = pnand %p806_p7, %p777_p3  ;;  %p814_p0 = scmp.lt.u32.totalorder %s805_s7, %s1121_s10 }
  0x5a   : > { %p813_p12 = por %p812_p11, %p811_p8 }
  0x5b   : > { %p809_p6 = pneg %p808_p4 }
  0x5c   : > { %p815_p5 = por %p814_p0, %p813_p12 }
  0x5e   : > { %p816_p9 = pnand %p815_p5, %p809_p6 }
  0x60   : > { %819 = shalt.err (!%p816_p9)
}
  0x61   : > { %s820_s2 = scalar_lea.vmem %s1123_s0, 256  ;;  %s933_s26 = smov [#allocation6]  }
  0x62   : > { %p821_p1 = scmp.ne.s32.totalorder %s1123_s0, %s820_s2  ;;  %s825_s30 = sshll.u32 %s933_s26, 4  ;;  %s826_s30 = int_to_ptr.vmem [resolvable:$false] %s825_s30 }
  0x63   : > { %s827_s14 = scalar_lea.vmem %s826_s30, 512  ;;  %p828_p4 = scmp.lt.s32.totalorder %s1123_s0, %s826_s30 }
  0x64   : > { %p823_p2 = pnand %p821_p1, %p777_p3  ;;  %p829_p8 = scmp.lt.s32.totalorder %s827_s14, %s820_s2 }
  0x66   : > { %p824_p7 = pneg %p823_p2  ;;  %p830_p11 = por %p829_p8, %p828_p4 }
  0x68   : > { %p831_p12 = pnand %p830_p11, %p824_p7 }
  0x6a   : > { %834 = shalt.err (!%p831_p12)
}
  0x6b   : > { %s1268_s7 = smov 8   ;;  %s1269_s6 = smov 128  }
  0x6c   : > { %676 = dma.hbm_to_vmem [thread:$0]  (!%p1083_p13), %s1121_s10, 256, %s1123_s0, %s1127_s29, %s1269_s6, %s1269_s6, %s1268_s7  }
  0x6d   : > { %p1270_p3 = scmp.ne.s32.totalorder %s1257_s25, 0 }
  0x6e   : > { %s1159_s8 = sand.u32 (!%p1270_p3), 1, %s909_s16   ;;  %p1271_p6 = scmp.ne.s32.totalorder (!%p1270_p3), %s1255_s23, 0 }
  0x6f   : > { %239 = sbr.rel (%p1270_p3) target bundleno = 604 (0x25c), region = 36  ;;  %s606_s13 = sshll.u32 (!%p1270_p3), %s1159_s8, 3 }
  0x70   : > { %s242_s12 = scalar_lea.sflag (!%p1270_p3), [#allocation4], %s1159_s8  ;;  %s1163_s27 = scalar_lea.vmem (!%p1270_p3), [#allocation3], %s606_s13 }
  0x76   : > { %888 = dma.done.wait (%p1271_p6), %s242_s12, 128  }
  0x77   : > { %890 = vsyncadd (%p1271_p6), %s242_s12, 4294967168  ;;  %s250_s0 = sand.u32 1, %s995_s21   ;;  %s607_s25 = sshll.u32 %s1159_s8, 4 }
  0x78   : > { %s251_s29 = scalar_lea.sflag [#allocation7], %s250_s0  ;;  %s254_s5 = scalar_lea.vmem [#allocation6], %s607_s25 }
  0x79   : > { %892 = dma.done.wait (%p1271_p6), %s251_s29, 256  }
  0x7a   : > { %894 = vsyncadd (%p1271_p6), %s251_s29, 4294967040  ;;  %p1272_p13 = scmp.eq.s32.totalorder %s995_s21, 0 }
  0x7c   : > { %896 = dma.done.wait (%p1272_p13), [#allocation7], 512   ;;  %p1273_p0 = pmov %p1272_p13 }
  0x7d   : > { %vm301_vm0 = vcmask 261120   ;;  %v297_v0 = vld [vmem:[#allocation8] sm:$0xff]  ;;  %v298_v1 = vld [vmem:[#allocation8 + $0x8] sm:$0xff]  ;;  %v299_v2 = vld [vmem:[#allocation8 + $0x10] sm:$0xff]  ;;  %v934_v8 = vmov 0.0   ;;  %vm935_vm1 = vmmov 0  }
  0x7e   : > { %898 = vsyncadd (%p1273_p0), [#allocation7], 4294966784  ;;  %v648_v3 = vpack.c.bf16 %v298_v1, %v297_v0  ;;  %v300_v4 = vld [vmem:[#allocation8 + $0x18] sm:$0xff]  ;;  %v295_v5 = vld [vmem:[%s254_s5] sm:$0xff]  ;;  %642 = vmatprep.subr.bf16.mxu1 %v934_v8  ;;  %644 = vmatprep.mubr.msk.bf16.mxu1 %vm935_vm1, %v934_v8  ;;  %vm400_vm2 = vcmask 130048   ;;  %s287_s10 = scalar_lea.vmem [#allocation9], %s607_s25 }
  0x7f   : > { %v652_v6 = vpack.c.bf16 %v300_v4, %v299_v2  ;;  %639 = vmatprep.mubr.msk.f32.mxu0 %vm301_vm0, %v295_v5  ;;  %v296_v7 = vld [vmem:[%s254_s5 + $0x8] sm:$0xff]  ;;  %v612_v13 = vld [vmem:[%s1245_s3] ss:$0 sm:$0xff]  ;;  %s475_s11 = sshll.u32 %s287_s10, 4  ;;  %s622_s22 = sshll.u32 %s917_s18, 8  ;;  %s1188_s11 = int_to_ptr.vmem [resolvable:$true] %s475_s11 }
  0x80   : > { %649 = vmatprep.subr.bf16.mxu0 %v648_v3  ;;  %v742_v12 = vld [vmem:[%s1163_s27] sm:$0xff]   ;;  %s1193_s26 = scalar_lea.hbm %s1246_s4, %s622_s22  ;;  %s460_s30 = scalar_lea.sflag [#allocation5], %s1159_s8 }
  0x81   : > { %651 = vmatpush3.bf16.msra.mxu0 %v648_v3  ;;  %s835_s14 = scalar_lea.vmem %s1188_s11, 256  ;;  %s936_s18 = smov [#allocation9]  }
  0x82   : > { %653 = vmatprep.subr.bf16.mxu0 %v652_v6  ;;  %p836_p5 = scmp.ne.s32.totalorder %s1188_s11, %s835_s14  ;;  %s839_s7 = sshll.u32 %s936_s18, 4  ;;  %s840_s7 = int_to_ptr.vmem [resolvable:$false] %s839_s7 }
  0x83   : > { %s841_s6 = scalar_lea.vmem %s840_s7, 512  ;;  %p842_p2 = scmp.lt.s32.totalorder %s1188_s11, %s840_s7 }
  0x84   : > { %p837_p9 = pnand %p836_p5, %p1059_p10  ;;  %p843_p7 = scmp.lt.s32.totalorder %s841_s6, %s835_s14 }
  0x85   : > { %655 = vmatpush3.bf16.msra.mxu0 %v652_v6 }
  0x86   : > { %p838_p1 = pneg %p837_p9  ;;  %p844_p4 = por %p843_p7, %p842_p2 }
  0x88   : > { %640 = vmatmul.mubr.msk.f32.vlgmr.msra.gmra.mrb[0].mxu0 %vm301_vm0, %v296_v7  ;;  %p845_p8 = pnand %p844_p4, %p838_p1 }
 0x15b   : > { %v641_v9 = vpop.f32.mrb[0].mxu0 }
 0x15c   : > { %v374_v10 = vpop.f32.mrb[1].mxu0 }
 0x15d   : > { %v383_v11 = vpack.c.bf16 %v641_v9, %v374_v10 }
 0x15f   : > { %643 = vmatpush3.bf16.msra.mxu1 %v383_v11 }
 0x162   : > { %645 = vmatmul.mubr.msk.bf16.vlgmr.msra.gmra.mrb[0].mxu1 %vm400_vm2, %v742_v12 }
 0x235   : > { %v438_v14 = vpop.f32.mrb[0].mxu1 }
 0x236   : > { %v439_v15 = vadd.f32 %v612_v13, %v438_v14  ;;  %v646_v16 = vpop.f32.mrb[1].mxu1 }
 0x237   : > { %v441_v17 = vpop.f32.mrb[2].mxu1 }
 0x238   : > { %v447_v18 = vmul.f32 %v439_v15, %v439_v15  ;;  %v442_v19 = vadd.f32 %v612_v13, %v441_v17  ;;  %v647_v20 = vpop.f32.mrb[3].mxu1  ;;  %v445_v25 = vmax.f32 %v439_v15, 0.0 }
 0x23a   : > { %v449_v21 = vadd.f32 1.0, %v447_v18  ;;  %v448_v22 = vmul.f32 %v442_v19, %v442_v19  ;;  %v446_v29 = vmax.f32 %v442_v19, 0.0 }
 0x23c   : > { %743 = vrcp.f32 %v449_v21  ;;  %v450_v23 = vadd.f32 1.0, %v448_v22 }
 0x23e   : > { %745 = vrcp.f32 %v450_v23 }
 0x246   : > { %v744_v24 = vpop.eup %743 }
 0x247   : > { %v453_v26 = vmul.f32 2.0, %v744_v24 }
 0x248   : > { %v746_v27 = vpop.eup %745 }
 0x249   : > { %v455_v28 = vsub.f32 %v445_v25, %v453_v26  ;;  %v454_v30 = vmul.f32 2.0, %v746_v27 }
 0x24b   : > { %457 = vst [vmem:[%s287_s10] sm:$0xff] %v455_v28  ;;  %v456_v31 = vsub.f32 %v446_v29, %v454_v30 }
 0x24d   : > { %458 = vst [vmem:[%s287_s10 + $0x8] sm:$0xff] %v456_v31 }
 0x24e   : > { %848 = shalt.err (!%p845_p8)
}
 0x24f   : > { %s849_s13 = scalar_lea.hbm %s1193_s26, 256  ;;  %s853_s0 = scalar_lea.hbm %s1246_s4, 512 }
 0x250   : > { %p850_p11 = scmp.ne.s32.totalorder %s1193_s26, %s849_s13  ;;  %p854_p6 = scmp.lt.u32.totalorder %s1193_s26, %s1246_s4 }
 0x251   : > { %p855_p13 = scmp.lt.u32.totalorder %s853_s0, %s849_s13  ;;  %p857_p5 = scmp.lt.u32.totalorder %s849_s13, %s1193_s26 }
 0x252   : > { %p851_p12 = pnand %p850_p11, %p1059_p10 }
 0x253   : > { %p856_p0 = por %p855_p13, %p854_p6 }
 0x254   : > { %p852_p3 = pneg %p851_p12 }
 0x255   : > { %p858_p9 = por %p857_p5, %p856_p0 }
 0x257   : > { %p859_p1 = pnand %p858_p9, %p852_p3 }
 0x259   : > { %862 = shalt.err (!%p859_p1)
}
 0x25a   : > { %s937_s5 = smov 128   ;;  %s938_s21 = smov 8  }
 0x25b   : > { %664 = dma.vmem_to_hbm [thread:$0]  (%p1059_p10), %s1188_s11, 256, %s1193_s26, %s460_s30, %s937_s5, %s937_s5, %s938_s21  }
 0x25c PF: > { %s490_s23 = sand.u32 1, %s905_s15   ;;  %p1274_p2 = scmp.ne.s32.totalorder %s1256_s24, 0 }
 0x25d   : > { %p1275_p7 = scmp.ge.s32.totalorder %s925_s20, 2  ;;  %s491_s10 = scalar_lea.sflag [#allocation5], %s490_s23 }
 0x25f   : > { %p678_p4 = pnand %p1275_p7, %p1274_p2 }
 0x261   : > { %900 = dma.done.wait (!%p678_p4), %s491_s10, 256  }
 0x262   : > { %902 = vsyncadd (!%p678_p4), %s491_s10, 4294967040  ;;  %s23_s20 = sadd.s32 1, %s925_s20   ;;  %s1276_s22 = sld [smem:[#allocation15_spill]] }
 0x263   : > { %p20_p8 = scmp.ge.s32.totalorder %s23_s20, 4   ;;  %s1277_s28 = sld [smem:[#allocation14_spill]] }
 0x264   : > { %s1278_s15 = smov %s909_s16  ;;  %s1279_s16 = smov %s913_s17 }
 0x265   : > { %s1281_s18 = smov %s921_s19  ;;  %22 = sbr.rel (!%p20_p8) target bundleno = 11 (0xb), region = 102 }
 0x268   : > { %s1280_s17 = smov %s1276_s22 }
 0x269   : > { %s1282_s19 = smov %s1277_s28 }
 0x26c   :  { %496 = vsyncpa [#allocation4], 1 }
 0x26d   :  { %498 = vsyncpa [#allocation4 + $0x1], 1 }
 0x26e   :  { %499 = vsyncpa [#allocation7], 1 }
 0x26f   :  { %501 = vsyncpa [#allocation7 + $0x1], 1 }
 0x270   :  { %502 = vsyncpa [#allocation5], 1 }
 0x271   :  { %504 = vsyncpa [#allocation5 + $0x1], 1 }

</bundles_post_ra>
